<compile_context>
chip_gen: v5e
topology: v5e:2x2
jax: 0.10.0
libtpu: 0.0.40
codegen_flags: <defaults>
</compile_context>

<pallas_src>
import math
import numpy as np
import jax
import jax.numpy as jnp
from jax import lax
from jax.experimental import pallas as pl
from jax.experimental.pallas import tpu as pltpu

F32 = jnp.float32
BF16 = jnp.bfloat16


# ----------------------------------------------------------------- small helpers
def _round_up(x, m):
    return ((x + m - 1) // m) * m


def _pad_rows(x, rows):
    pad = rows - x.shape[0]
    if pad <= 0:
        return x
    return jnp.concatenate([x, jnp.zeros((pad,) + x.shape[1:], x.dtype)], axis=0)


def _pad_cols(x, cols):
    pad = cols - x.shape[1]
    if pad <= 0:
        return x
    return jnp.concatenate([x, jnp.zeros((x.shape[0], pad), x.dtype)], axis=1)


def _single_block_call(kernel, out_shape, out_dtype, *args):
    # Whole-array blocks (block == full array dims, so no (8,128) divisibility issue).
    return pl.pallas_call(
        kernel,
        out_shape=jax.ShapeDtypeStruct(out_shape, out_dtype),
        in_specs=[pl.BlockSpec(a.shape, lambda *_: (0, 0)) for a in args],
        out_specs=pl.BlockSpec(out_shape, lambda *_: (0, 0)),
    )(*args)


# ----------------------------------------------------------------- Pallas kernels
def _qkv_proj_kernel(x_ref, w_ref, b_ref, o_ref):
    # o = x @ [Wq|Wk|Wv] + [bq|bk|bv]; per-branch (linear -> type_mapping) pre-folded.
    # bf16 MXU operands, f32 accumulation, bf16 lane-dense output.
    x = x_ref[...].astype(BF16)
    w = w_ref[...].astype(BF16)
    acc = jnp.dot(x, w, preferred_element_type=jnp.float32) + b_ref[...]
    o_ref[...] = acc.astype(o_ref.dtype)


def _delta_kernel(h_ref, m_ref, w_ref, b_ref, o_ref):
    # LeakyReLU( [h | n_linear(m)] @ W_delta.T + b ); n_linear folded into W/b,
    # single matmul with contraction 2*out_dim.
    # TODO(synk): dropout layers of the source module are applied in eval mode (identity).
    hm = jnp.concatenate([h_ref[...].astype(BF16), m_ref[...].astype(BF16)], axis=-1)
    z = jnp.dot(hm, w_ref[...].astype(BF16),
                preferred_element_type=jnp.float32) + b_ref[...]
    o_ref[...] = jnp.where(z >= 0.0, z, 0.01 * z)          # LeakyReLU(0.01)


def _gather_kv_kernel(g_ref, kv_ref, o_ref):
    # Per-message [K|V] = one_hot(src) @ [K|V]   (exact in bf16: one-hot is 0/1).
    # Runs ONCE per attention call (hoisted out of the per-dst-tile grid).
    o_ref[...] = jnp.dot(g_ref[...], kv_ref[...],
                         preferred_element_type=jnp.float32).astype(o_ref.dtype)


def _make_attn_kernel(n_heads, d_k, tile_n, lp, pad_cols):
    """Per-destination edge-softmax attention over a row tile of destinations.
       Q is pre-scaled by 1/sqrt(d_k); only python-literal constants inside."""
    hd = n_heads * d_k

    def kernel(dst_ref, q_ref, kv_ref, o_ref):
        q = q_ref[...]                                    # (tile_n, hd)   bf16
        kv = kv_ref[...]                                  # (lp, kvc)      bf16: [K|V|0pad]

        # In-kernel one-hot mask from int32 dst indices (no HBM mask traffic).
        row0 = pl.program_id(0) * tile_n
        rows = lax.broadcasted_iota(jnp.int32, (tile_n, lp), 0) + row0
        mask = dst_ref[...] == rows                       # (tile_n, lp)

        outs = []
        for h in range(n_heads):
            lo = h * d_k
            qh = q[:, lo:lo + d_k]
            kh = kv[:, lo:lo + d_k]
            vh = kv[:, hd + lo:hd + lo + d_k]
            # TODO(synk): contraction depth d_k is small; a block-diagonal K^T/V layout
            # would raise MXU utilization further (left as-is for robustness).
            s = lax.dot_general(qh, kh, (((1,), (1,)), ((), ())),
                                preferred_element_type=jnp.float32)
            logits = jnp.where(mask, s, -1e30)
            mx = jnp.max(logits, axis=-1, keepdims=True)
            p = jnp.where(mask, jnp.exp(logits - mx), 0.0)
            # clamp only matters for zero-in-degree rows (p == 0 there -> output 0)
            denom = jnp.maximum(jnp.sum(p, axis=-1, keepdims=True), 1e-6)
            att = (p * pl.reciprocal(denom, approx=True)).astype(BF16)
            outs.append(jnp.dot(att, vh, preferred_element_type=jnp.float32))
        if pad_cols > 0:
            outs.append(jnp.zeros((tile_n, pad_cols), jnp.float32))
        o_ref[...] = jnp.concatenate(outs, axis=-1).astype(o_ref.dtype)  # lane-dense store

    return kernel


# ----------------------------------------------------------------- op wrappers
def _fold_two_linears(lin1, lin2, scale=1.0):
    # (x @ W1.T + b1) @ W2.T + b2  ==  x @ Weff + beff  (static weights -> fold once)
    W1, b1 = lin1
    W2, b2 = lin2
    Weff = jnp.dot(W1.T, W2.T, precision=lax.Precision.HIGHEST)
    beff = jnp.dot(b1[None, :], W2.T, precision=lax.Precision.HIGHEST)[0] + b2
    return Weff * scale, beff * scale


def qkv_projection(x, lin_q, lin_k, lin_v, type_map, q_scale, use_pallas):
    """Q/K/V = type_mapping(n_{q,k,v}_linear(x)); Q pre-scaled by 1/sqrt(d_k)."""
    if not use_pallas:   # faithful two-step reference
        def two_step(lin):
            return (x @ lin[0].T + lin[1]) @ type_map[0].T + type_map[1]
        return two_step(lin_q) * q_scale, two_step(lin_k), two_step(lin_v)

    Wq, bq = _fold_two_linears(lin_q, type_map, q_scale)
    Wk, bk = _fold_two_linears(lin_k, type_map)
    Wv, bv = _fold_two_linears(lin_v, type_map)
    D = Wq.shape[1]
    W = jnp.concatenate([Wq, Wk, Wv], axis=1)        # (in, 3*out)
    b = jnp.concatenate([bq, bk, bv])
    cols_p = _round_up(W.shape[1], 128)              # lane-dense output store
    W = _pad_cols(W, cols_p)
    b = _pad_cols(b[None, :], cols_p)
    out = _single_block_call(_qkv_proj_kernel, (x.shape[0], cols_p), BF16, x, W, b)
    return out[:, :D], out[:, D:2 * D], out[:, 2 * D:3 * D]


def graph_attention(q_nodes, k_feat, v_feat, dst_idx, src_idx, n_dst,
                    n_heads, d_k, use_pallas):
    """Generic per-destination edge-softmax attention (Q already pre-scaled).
       src_idx is None  -> k_feat/v_feat are already per-message (no gather at all).
       src_idx not None -> k_feat/v_feat are per-source; gathered ONCE by a separate
                           pallas_call via a bf16 one-hot matmul (exact)."""
    L = int(dst_idx.shape[0])
    hd = n_heads * d_k
    dst_np = np.asarray(dst_idx, np.int32)

    if not use_pallas:   # pure-JAX reference of the same math
        di = jnp.asarray(dst_np)
        if src_idx is None:
            km = k_feat.reshape(L, n_heads, d_k)
            vm = v_feat.reshape(L, n_heads, d_k)
        else:
            si = jnp.asarray(np.asarray(src_idx, np.int32))
            km = k_feat[si].reshape(L, n_heads, d_k)
            vm = v_feat[si].reshape(L, n_heads, d_k)
        qm = q_nodes[di].reshape(L, n_heads, d_k)
        s = (qm * km).sum(-1)                                      # (L, H)
        mask = di[None, :] == jnp.arange(n_dst)[:, None]           # (n_dst, L)
        logits = jnp.where(mask[:, :, None], s[None, :, :], -1e30)
        mx = logits.max(axis=1, keepdims=True)
        p = jnp.where(mask[:, :, None], jnp.exp(logits - mx), 0.0)
        att = p / jnp.maximum(p.sum(axis=1, keepdims=True), 1e-30)
        return jnp.einsum('nlh,lhd->nhd', att, vm).reshape(n_dst, hd)

    # ---------------- Pallas path ----------------
    # TODO(synk): for production graph sizes, replace this dense masked-softmax / one-hot
    # gather with a dst-sorted CSR segment formulation (PrefetchScalarGridSpec-driven
    # index_map) and tile the message axis with an online-softmax accumulator.
    ndp = _round_up(max(n_dst, 16), 16)
    tile_n = min(256, ndp)            # 256-row dst tiles fill the 256-wide v6e/v7x MXU
    ndp = _round_up(ndp, tile_n)
    lp = _round_up(max(L, 128), 128)
    kvc = _round_up(2 * hd, 128)
    cols_p = _round_up(hd, 128)       # lane-dense (128-wide) output

    q = _pad_rows(q_nodes.astype(BF16), ndp)
    dst_pad = np.full((1, lp), -1, np.int32)          # -1 never matches a real row
    dst_pad[0, :L] = dst_np
    dst = jnp.asarray(dst_pad)

    if src_idx is None:
        # K/V already live on the messages: no gather at all.
        kv_msg = _pad_rows(
            _pad_cols(jnp.concatenate([k_feat, v_feat], axis=1).astype(BF16), kvc), lp)
    else:
        # One-time src gather in its OWN pallas_call (hoisted out of the dst-tile grid).
        n_src = k_feat.shape[0]
        src_rows = _round_up(max(n_src, 16), 16)
        kv = _pad_rows(
            _pad_cols(jnp.concatenate([k_feat, v_feat], axis=1).astype(BF16), kvc),
            src_rows)
        src_np = np.asarray(src_idx, np.int32)
        g_np = np.zeros((lp, src_rows), np.float32)
        g_np[np.arange(L), src_np] = 1.0
        g = jnp.asarray(g_np).astype(BF16)
        kv_msg = _single_block_call(_gather_kv_kernel, (lp, kvc), BF16, g, kv)

    kernel = _make_attn_kernel(n_heads, d_k, tile_n, lp, cols_p - hd)
    out = pl.pallas_call(
        kernel,
        out_shape=jax.ShapeDtypeStruct((ndp, cols_p), BF16),
        grid=(ndp // tile_n,),
        in_specs=[
            pl.BlockSpec((1, lp), lambda i: (0, 0)),         # dst indices (grid-invariant)
            pl.BlockSpec((tile_n, hd), lambda i: (i, 0)),    # Q row tile
            pl.BlockSpec((lp, kvc), lambda i: (0, 0)),       # per-message [K|V] (invariant)
        ],
        out_specs=pl.BlockSpec((tile_n, cols_p), lambda i: (i, 0)),
        compiler_params=pltpu.CompilerParams(
            dimension_semantics=("parallel",),        # both v7x TensorCores usable
            vmem_limit_bytes=48 * 1024 * 1024),       # below v7x's 64 MiB physical VMEM
    )(dst, q, kv_msg)
    return out[:n_dst, :hd]


def delta_update(h, m, n_lin, w_delta, use_pallas):
    Wl, bl = n_lin           # n_linear (out, out), (out,)
    Wd, bd = w_delta         # W_delta  (out, 2*out), (out,)
    out_dim = Wl.shape[0]
    if not use_pallas:
        lin_m = m @ Wl.T + bl
        z = jnp.concatenate([h, lin_m], axis=1) @ Wd.T + bd
        return jnp.where(z >= 0.0, z, 0.01 * z)
    WdT = Wd.T                                                        # (2*out, out)
    WA = WdT[:out_dim, :]                                             # acts on h
    WB = jnp.dot(Wl.T, WdT[out_dim:, :], precision=lax.Precision.HIGHEST)   # n_linear folded
    bv = jnp.dot(bl[None, :], WdT[out_dim:, :], precision=lax.Precision.HIGHEST)[0] + bd
    cols_p = _round_up(out_dim, 128)                                  # lane-dense store
    W = _pad_cols(jnp.concatenate([WA, WB], axis=0), cols_p)          # one stacked matmul
    b = _pad_cols(bv[None, :], cols_p)
    out = _single_block_call(_delta_kernel, (h.shape[0], cols_p), F32, h, m, W, b)
    return out[:, :out_dim]


# ----------------------------------------------------------------- parameters
def init_linear(key, in_f, out_f):
    kw, kb = jax.random.split(key)
    bound = 1.0 / math.sqrt(in_f)
    W = jax.random.uniform(kw, (out_f, in_f), minval=-bound, maxval=bound, dtype=F32)
    b = jax.random.uniform(kb, (out_f,), minval=-bound, maxval=bound, dtype=F32)
    return W, b


def init_params(key, in_dim, out_dim, num_types, num_relations):
    params = {}

    def take():
        nonlocal key
        key, sub = jax.random.split(key)
        return sub

    params['n_k'] = [init_linear(take(), in_dim, out_dim) for _ in range(num_types)]
    params['n_q'] = [init_linear(take(), in_dim, out_dim) for _ in range(num_types)]
    params['n_v'] = [init_linear(take(), in_dim, out_dim) for _ in range(num_types)]
    params['e_k'] = [init_linear(take(), in_dim, out_dim) for _ in range(num_relations)]
    params['e_q'] = [init_linear(take(), in_dim, out_dim) for _ in range(num_relations)]
    params['e_v'] = [init_linear(take(), in_dim, out_dim) for _ in range(num_relations)]
    params['n_linear'] = init_linear(take(), out_dim, out_dim)
    params['e_linear'] = init_linear(take(), out_dim, out_dim)  # unused: source uses n_linear for edges too
    # TODO(synk): source __init__ resets W_n_delta/W_e_delta to empty ModuleLists (a bug
    # that would crash its forward); we keep the intended Linear(2*out_dim, out_dim) weights.
    params['w_n_delta'] = [init_linear(take(), 2 * out_dim, out_dim) for _ in range(num_types)]
    params['w_e_delta'] = [init_linear(take(), 2 * out_dim, out_dim) for _ in range(num_relations)]
    params['type_map'] = [init_linear(take(), out_dim, out_dim)
                          for _ in range(num_types + num_relations)]
    return params


# ----------------------------------------------------------------- HGT forward
def hgt_forward(params, graph, node_dict, edge_dict, n_heads, use_pallas):
    out_dim = params['n_linear'][0].shape[0]
    d_k = out_dim // n_heads
    q_scale = 1.0 / math.sqrt(d_k)      # folded into the Q projections (no in-kernel scale)
    num_types = len(node_dict)

    node_h = graph['node_h']
    edge_h = graph['edge_h']
    canonical = graph['canonical']      # [(srctype, etype, dsttype), ...]
    edges = graph['edges']              # etype -> (src ids, dst ids) in typed node spaces
    ntype_order = graph['ntype_order']  # homogeneous node ordering (== node_ids_dict)

    # ---- per-node-type Q/K/V (one fused pallas_call per type) --------------------
    # TODO(synk): batch the per-type projection/delta calls into one gridded call with a
    # scalar-prefetch type-id selecting stacked weights in the index_map.
    nQ, nK, nV = {}, {}, {}
    for nt in ntype_order:
        ti = node_dict[nt]
        nQ[nt], nK[nt], nV[nt] = qkv_projection(
            node_h[nt], params['n_q'][ti], params['n_k'][ti], params['n_v'][ti],
            params['type_map'][ti], q_scale, use_pallas)

    # ---- per-edge-type Q/K/V on (edge_h + src node h) ----------------------------
    eQ, eK, eV = {}, {}, {}
    for (st, et, dt) in canonical:
        ti = edge_dict[et]
        src_ids = jnp.asarray(edges[et][0], jnp.int32)
        x = edge_h[et] + node_h[st][src_ids]            # glue gather
        eQ[et], eK[et], eV[et] = qkv_projection(
            x, params['e_q'][ti], params['e_k'][ti], params['e_v'][ti],
            params['type_map'][num_types + ti], q_scale, use_pallas)

    # ---- dgl.to_homogeneous ------------------------------------------------------
    node_offset, off = {}, 0
    for nt in ntype_order:
        node_offset[nt] = off
        off += node_h[nt].shape[0]
    N = off
    edge_offset, eoff = {}, 0
    for (_, et, _) in canonical:
        edge_offset[et] = eoff
        eoff += edge_h[et].shape[0]
    E = eoff

    Qn = jnp.concatenate([nQ[nt] for nt in ntype_order], axis=0)
    Kn = jnp.concatenate([nK[nt] for nt in ntype_order], axis=0)
    Vn = jnp.concatenate([nV[nt] for nt in ntype_order], axis=0)
    Qe = jnp.concatenate([eQ[et] for (_, et, _) in canonical], axis=0)
    Ke = jnp.concatenate([eK[et] for (_, et, _) in canonical], axis=0)
    Ve = jnp.concatenate([eV[et] for (_, et, _) in canonical], axis=0)

    src_h = np.concatenate([node_offset[st] + np.asarray(edges[et][0])
                            for (st, et, _) in canonical]).astype(np.int32)
    dst_h = np.concatenate([node_offset[dt] + np.asarray(edges[et][1])
                            for (_, et, dt) in canonical]).astype(np.int32)

    # ho: v_dot_e('Q','K') -> edge_softmax(dst) -> sum(att * edge V) per dst node.
    # K/V already live on the messages (the edges) -> no gather.
    m_ho = graph_attention(Qn, Ke, Ve, dst_idx=dst_h, src_idx=None, n_dst=N,
                           n_heads=n_heads, d_k=d_k, use_pallas=use_pallas)     # (N, out_dim)

    # ---- line graph (shared edata) + appended ho nodes + src->edge links ---------
    Ql = jnp.concatenate([Qe, Qn], axis=0)
    Kl = jnp.concatenate([Ke, Kn], axis=0)
    Vl = jnp.concatenate([Ve, Vn], axis=0)
    # TODO(synk): O(E^2) host-side line-graph construction; fine for toy graphs only.
    e1, e2 = np.nonzero(dst_h[:, None] == src_h[None, :])      # dst(e1) == src(e2)
    lsrc = np.concatenate([e1, E + src_h]).astype(np.int32)    # + lg.add_edges(ho_src+E -> e)
    ldst = np.concatenate([e2, np.arange(E)]).astype(np.int32)

    # lg: v_dot_u('Q','K') -> edge_softmax(dst) -> sum(att * u's V) per lg node.
    # Only lg nodes [0, E) ever receive messages and only those rows are consumed
    # below, so n_dst = E (not E + N): the appended ho-node rows would be all-zero.
    m_lg = graph_attention(Ql, Kl, Vl, dst_idx=ldst, src_idx=lsrc, n_dst=E,
                           n_heads=n_heads, d_k=d_k, use_pallas=use_pallas)     # (E, out_dim)

    # ---- output updates ----------------------------------------------------------
    new_node_h, new_edge_h = {}, {}
    for nt in ntype_order:
        ti = node_dict[nt]
        s = node_offset[nt]; e = s + node_h[nt].shape[0]
        new_node_h[nt] = delta_update(node_h[nt], m_ho[s:e],
                                      params['n_linear'], params['w_n_delta'][ti], use_pallas)
    for (_, et, _) in canonical:
        ti = edge_dict[et]
        s = edge_offset[et]; e = s + edge_h[et].shape[0]
        # NOTE: source module uses self.n_linear (not e_linear) for edges — reproduced.
        new_edge_h[et] = delta_update(edge_h[et], m_lg[s:e],
                                      params['n_linear'], params['w_e_delta'][ti], use_pallas)
    return new_node_h, new_edge_h


# ----------------------------------------------------------------- demo / check
if __name__ == "__main__":
    in_dim = 32
    out_dim = 32          # module implicitly assumes in_dim == out_dim (concat + W_delta)
    n_heads = 4
    node_dict = {'a': 0, 'b': 1}
    edge_dict = {'ab': 0, 'ba': 1}
    canonical = [('a', 'ab', 'b'), ('b', 'ba', 'a')]
    n_nodes = {'a': 8, 'b': 8}
    n_edges = {'ab': 12, 'ba': 12}

    root = jax.random.PRNGKey(0)
    kp, kg = jax.random.split(root)
    params = init_params(kp, in_dim, out_dim, len(node_dict), len(edge_dict))

    keys = jax.random.split(kg, 8)
    node_h = {'a': jax.random.normal(keys[0], (n_nodes['a'], in_dim), dtype=F32),
              'b': jax.random.normal(keys[1], (n_nodes['b'], in_dim), dtype=F32)}
    edge_h = {'ab': jax.random.normal(keys[2], (n_edges['ab'], in_dim), dtype=F32),
              'ba': jax.random.normal(keys[3], (n_edges['ba'], in_dim), dtype=F32)}
    edges = {}
    for i, (st, et, dt) in enumerate(canonical):
        src = np.asarray(jax.random.randint(keys[4 + 2 * i], (n_edges[et],), 0, n_nodes[st]))
        dst = np.asarray(jax.random.randint(keys[5 + 2 * i], (n_edges[et],), 0, n_nodes[dt]))
        edges[et] = (src, dst)

    graph = dict(node_h=node_h, edge_h=edge_h, edges=edges,
                 canonical=canonical, ntype_order=['a', 'b'])

    out_n, out_e = hgt_forward(params, graph, node_dict, edge_dict, n_heads, use_pallas=True)
    jax.block_until_ready((out_n, out_e))

    ref_n, ref_e = hgt_forward(params, graph, node_dict, edge_dict, n_heads, use_pallas=False)
    jax.block_until_ready((ref_n, ref_e))

    ok = True
    for k in out_n:
        ok &= np.allclose(np.asarray(out_n[k]), np.asarray(ref_n[k]), atol=2e-2, rtol=2e-2)
    for k in out_e:
        ok &= np.allclose(np.asarray(out_e[k]), np.asarray(ref_e[k]), atol=2e-2, rtol=2e-2)
    assert ok, "Pallas output does not match pure-JAX reference"
    print("KERNEL_OK")
</pallas_src>

<mosaic_0001>
module attributes {stable_mosaic.version = 11 : i64} {
  func.func @_qkv_proj_kernel(%arg0: memref<8x32xf32, #tpu.memory_space<vmem>>, %arg1: memref<32x128xf32, #tpu.memory_space<vmem>>, %arg2: memref<1x128xf32, #tpu.memory_space<vmem>>, %arg3: memref<8x128xbf16, #tpu.memory_space<vmem>>) attributes {dimension_semantics = [], scalar_prefetch = 0 : i64, scratch_operands = 0 : i64, tpu.core_type = #tpu.core_type<tc>} {
    %c0 = arith.constant 0 : index
    %c0_0 = arith.constant 0 : index
    %0 = vector.load %arg0[%c0, %c0_0] : memref<8x32xf32, #tpu.memory_space<vmem>>, vector<8x32xf32>
    %1 = arith.truncf %0 : vector<8x32xf32> to vector<8x32xbf16>
    %c0_1 = arith.constant 0 : index
    %c0_2 = arith.constant 0 : index
    %2 = vector.load %arg1[%c0_1, %c0_2] : memref<32x128xf32, #tpu.memory_space<vmem>>, vector<32x128xf32>
    %3 = arith.truncf %2 : vector<32x128xf32> to vector<32x128xbf16>
    %cst = arith.constant dense<0.000000e+00> : vector<8x128xf32>
    %4 = tpu.matmul %1, %3, %cst {dimension_numbers = #tpu.dot_dimension_numbers<[1], [0], [0], [1], [0, 0, 1, 1], [], []>} : vector<8x32xbf16>, vector<32x128xbf16>, vector<8x128xf32> -> vector<8x128xf32>
    %c0_3 = arith.constant 0 : index
    %c0_4 = arith.constant 0 : index
    %5 = vector.load %arg2[%c0_3, %c0_4] : memref<1x128xf32, #tpu.memory_space<vmem>>, vector<1x128xf32>
    %6 = vector.broadcast %5 : vector<1x128xf32> to vector<8x128xf32>
    %7 = arith.addf %4, %6 : vector<8x128xf32>
    %8 = arith.truncf %7 : vector<8x128xf32> to vector<8x128xbf16>
    %c0_5 = arith.constant 0 : index
    %c0_6 = arith.constant 0 : index
    %9 = vector.load %arg3[%c0_5, %c0_6] : memref<8x128xbf16, #tpu.memory_space<vmem>>, vector<8x128xbf16>
    tpu.vector_store %arg3[%c0_5, %c0_6], %8 {strides = array<i32>} : memref<8x128xbf16, #tpu.memory_space<vmem>>, vector<8x128xbf16>,
    return
  }
}

</mosaic_0001>

<bundles_post_ra>
// kernel: tpu_custom_call.1
= control target key start
LH: loop header
LB: loop body
LE: loop exit
PB: predicated region body
PF: predicated region fallthrough
CT: control target
= control target key end

     0   :  { %8 = vsyncpa [#allocation3], 0  ;;  %s217_s0 = inlined_call_operand.hbm [shape: f32[8,32], index: 0, kind: input, shape index: {}]   ;;  %s218_s1 = inlined_call_operand.hbm [shape: f32[32,128], index: 1, kind: input, shape index: {}]   ;;  %s219_s2 = inlined_call_operand.vmem [shape: f32[1,128], index: 2, kind: input, shape index: {}]   ;;  %s220_s3 = inlined_call_operand.hbm [shape: bf16[8,128], index: 3, kind: output, shape index: {}]  }
   0x1   :  { %9 = vsyncpa [#allocation6], 0 }
   0x2   :  { %10 = vsyncpa [#allocation4], 0  ;;  %s16_s14 = sshll.u32 %s217_s0, 4  ;;  %s180_s15 = smov [#allocation2]   ;;  %s17_s14 = int_to_ptr.hbm [resolvable:$true] %s16_s14 }
   0x3   :  { %s18_s16 = sshll.u32 %s180_s15, 4  ;;  %s26_s19 = sshll.u32 %s218_s1, 4  ;;  %s19_s16 = int_to_ptr.vmem [resolvable:$true] %s18_s16  ;;  %s27_s19 = int_to_ptr.hbm [resolvable:$true] %s26_s19 }
   0x4   :  { %21 = dma.hbm_to_vmem [thread:$0]  %s17_s14, 128, %s19_s16, [#allocation3]  }
   0x5   :  { %s181_s20 = smov [#allocation5]   ;;  %s182_s22 = smov 128  }
   0x6   :  { %s28_s21 = sshll.u32 %s181_s20, 4  ;;  %s183_s23 = smov 8   ;;  %s29_s21 = int_to_ptr.vmem [resolvable:$true] %s28_s21 }
   0x7   :  { %34 = dma.hbm_to_vmem [thread:$0]  %s27_s19, 512, %s29_s21, [#allocation6], %s182_s22, %s182_s22, %s183_s23  }
   0x8   :  { %174 = dma.done.wait [#allocation3], 128  }
   0x9   :  { %175 = vsyncadd [#allocation3], 4294967168 }
   0xa   :  { %176 = dma.done.wait [#allocation6], 512  }
   0xb   :  { %177 = vsyncadd [#allocation6], 4294966784  ;;  %v50_v0 = vld [vmem:[#allocation5 + $0x10] sm:$0xff]  ;;  %v51_v1 = vld [vmem:[#allocation5 + $0x18] sm:$0xff]  ;;  %vm58_vm0 = vcmask 261120   ;;  %s184_s24 = smov [#allocation7]  }
   0xc   :  { %v48_v2 = vld [vmem:[#allocation5] sm:$0xff]  ;;  %v53_v3 = vpack.c.bf16 %v51_v1, %v50_v0  ;;  %v49_v4 = vld [vmem:[#allocation5 + $0x8] sm:$0xff]  ;;  %v46_v6 = vld [vmem:[#allocation2] sm:$0xff]  ;;  %s82_s25 = sshll.u32 %s184_s24, 4  ;;  %s84_s28 = sshll.u32 %s220_s3, 4  ;;  %s83_s25 = int_to_ptr.vmem [resolvable:$true] %s82_s25  ;;  %s85_s28 = int_to_ptr.hbm [resolvable:$true] %s84_s28 }
   0xd   :  { %v52_v5 = vpack.c.bf16 %v49_v4, %v48_v2  ;;  %v47_v7 = vpack.c.bf16 %v46_v6, %v46_v6  ;;  %v101_v8 = vld [vmem:[%s219_s2] ss:$0 sm:$0xff] }
   0xe   :  { %68 = vmatpush.bf16.msra.mxu0 %v53_v3 }
  0x12   :  { %69 = vmatpush.bf16.msra.mxu0 %v52_v5 }
  0x15   :  { %95 = vmatmul.msk.bf16.vlgmr.msra.gmra.mxu0 %vm58_vm0, %v47_v7 }
  0x92   :  { %v71_v9 = vpop.f32.mrf.mxu0 }
  0x93   :  { %v72_v10 = vadd.f32 %v101_v8, %v71_v9 }
  0x95   :  { %v75_v11 = vpack.c.bf16 %v72_v10, %v72_v10 }
  0x97   :  { %76 = vst [vmem:[#allocation7] sm:$0xf] %v75_v11 }
  0x98   :  { %87 = dma.vmem_to_hbm [thread:$0]  %s83_s25, 64, %s85_s28, [#allocation4]  }
  0x9a   :  { %v73_v12 = vpop.f32.mrf.mxu0 }
  0x9b   :  { %178 = dma.done.wait [#allocation4], 64  }
  0x9c   :  { %179 = vsyncadd [#allocation4], 4294967232 }
  0x9d   :  { %92 = vsyncpa [#allocation3], 1 }
  0x9e   :  { %93 = vsyncpa [#allocation6], 1 }
  0x9f   :  { %94 = vsyncpa [#allocation4], 1 }

</bundles_post_ra>
